<compile_context>
chip_gen: v7x
topology: tpu7x:2x2x1
jax: 0.10.0
libtpu: 0.0.40
codegen_flags: <defaults>
</compile_context>

<pallas_src>
import jax
import jax.numpy as jnp
from jax.experimental import pallas as pl
from jax.experimental.pallas import tpu as pltpu

SMOOTH = 0.001


def _round_up(x, m):
    return ((x + m - 1) // m) * m


def _bce_dice_partials_kernel(yp_ref, yt_ref,
                              inter_out, tsum_out, psum_out, bce_out,
                              inter_acc, tsum_acc, psum_acc, bce_acc):
    r = pl.program_id(1)

    @pl.when(r == 0)
    def _init():
        inter_acc[...] = jnp.zeros_like(inter_acc)
        tsum_acc[...] = jnp.zeros_like(tsum_acc)
        psum_acc[...] = jnp.zeros_like(psum_acc)
        bce_acc[...] = jnp.zeros_like(bce_acc)

    # (1, BLOCK_R, LANES) block for sample `b`; cast to f32 inside the kernel.
    yp = yp_ref[0].astype(jnp.float32)          # (BLOCK_R, LANES)
    yt = yt_ref[0].astype(jnp.float32)

    # Dice partial sums (lane-wise accumulation; cross-lane reduce deferred).
    inter_acc[...] += jnp.sum(yp * yt, axis=0, keepdims=True)
    tsum_acc[...] += jnp.sum(yt, axis=0, keepdims=True)
    psum_acc[...] += jnp.sum(yp, axis=0, keepdims=True)

    # BCE partial sum with PyTorch's log clamp at -100 (EUP logs hide under DMA).
    log_p = jnp.maximum(jnp.log(yp), -100.0)
    log_1mp = jnp.maximum(jnp.log(1.0 - yp), -100.0)
    bce_acc[...] += jnp.sum(yt * log_p + (1.0 - yt) * log_1mp,
                            axis=0, keepdims=True)

    @pl.when(r == pl.num_programs(1) - 1)
    def _finalize():
        # One cross-lane reduce + one tiny store per sample.
        inter_out[...] = jnp.sum(inter_acc[...]).reshape(1, 1, 1)
        tsum_out[...] = jnp.sum(tsum_acc[...]).reshape(1, 1, 1)
        psum_out[...] = jnp.sum(psum_acc[...]).reshape(1, 1, 1)
        bce_out[...] = jnp.sum(bce_acc[...]).reshape(1, 1, 1)


def bce_dice_loss(y_pred, y_true, *, lanes=512, max_block_rows=1024):
    """y_pred, y_true: (B, C, H, W); y_pred holds probabilities in (0, 1)."""
    b = y_pred.shape[0]
    yp = y_pred.reshape(b, -1)       # keep caller dtype (bf16 OK); no f32 copy
    yt = y_true.reshape(b, -1)
    n = yp.shape[1]

    # Lane-dense layout: (B, R, LANES), BLOCK_R multiple of 8, LANES mult of 128.
    lanes = min(lanes, _round_up(n, 128))
    r_needed = pl.cdiv(n, lanes)
    block_r = min(max_block_rows, _round_up(r_needed, 8))
    r_total = _round_up(r_needed, block_r)
    n_pad = r_total * lanes
    if n_pad != n:
        # Zero padding contributes exactly 0 to all partial sums (for BCE:
        # yt = 0 and log(1 - 0) = 0), so no in-kernel masking is required.
        yp = jnp.pad(yp, ((0, 0), (0, n_pad - n)))
        yt = jnp.pad(yt, ((0, 0), (0, n_pad - n)))
    yp = yp.reshape(b, r_total, lanes)
    yt = yt.reshape(b, r_total, lanes)

    grid = (b, r_total // block_r)
    in_spec = pl.BlockSpec((1, block_r, lanes), lambda bi, ri: (bi, ri, 0))
    out_spec = pl.BlockSpec((1, 1, 1), lambda bi, ri: (bi, 0, 0))

    inter, tsum, psum, bce_sum = pl.pallas_call(
        _bce_dice_partials_kernel,
        out_shape=tuple(jax.ShapeDtypeStruct((b, 1, 1), jnp.float32)
                        for _ in range(4)),
        grid_spec=pltpu.PrefetchScalarGridSpec(
            num_scalar_prefetch=0,
            grid=grid,
            in_specs=[in_spec, in_spec],
            out_specs=[out_spec, out_spec, out_spec, out_spec],
            scratch_shapes=[pltpu.VMEM((1, lanes), jnp.float32)
                            for _ in range(4)]),
        compiler_params=pltpu.CompilerParams(
            dimension_semantics=("parallel", "arbitrary")),
    )(yp, yt)

    inter = inter[:, 0, 0]
    tsum = tsum[:, 0, 0]
    psum = psum[:, 0, 0]
    bce_sum = bce_sum[:, 0, 0]

    # Tiny per-sample scalar finalization (B values) -- off the hot path.
    score = (2.0 * inter + SMOOTH) / (tsum + psum + SMOOTH)
    dice_loss = 1.0 - jnp.sum(score) / b
    bce_loss = -jnp.sum(bce_sum) * (1.0 / (b * n))
    return dice_loss + bce_loss


def _reference(y_pred, y_true):
    # Pure-JAX reference mirroring the PyTorch BCEDiceLoss module.
    b = y_pred.shape[0]
    m1 = y_true.reshape(b, -1).astype(jnp.float32)
    m2 = y_pred.reshape(b, -1).astype(jnp.float32)
    inter = jnp.sum(m1 * m2, axis=1)
    score = (2.0 * inter + SMOOTH) / (jnp.sum(m1, 1) + jnp.sum(m2, 1) + SMOOTH)
    dice = 1.0 - jnp.sum(score) / b
    log_p = jnp.maximum(jnp.log(m2), -100.0)
    log_1mp = jnp.maximum(jnp.log(1.0 - m2), -100.0)
    bce = jnp.mean(-(m1 * log_p + (1.0 - m1) * log_1mp))
    return dice + bce


if __name__ == "__main__":
    key = jax.random.PRNGKey(0)
    k1, k2 = jax.random.split(key)

    B, C, H, W = 2, 4, 16, 16
    # Predictions are probabilities (post-sigmoid), targets are binary masks.
    y_pred = jax.random.uniform(k1, (B, C, H, W), jnp.float32,
                                minval=0.01, maxval=0.99)
    y_true = (jax.random.uniform(k2, (B, C, H, W), jnp.float32) > 0.5).astype(
        jnp.float32)

    loss = jax.block_until_ready(bce_dice_loss(y_pred, y_true))
    ref = jax.block_until_ready(_reference(y_pred, y_true))
    assert jnp.allclose(loss, ref, rtol=1e-5, atol=1e-5), (loss, ref)

    print("KERNEL_OK")
</pallas_src>

<mosaic_0001>
module attributes {stable_mosaic.version = 11 : i64} {
  func.func @_bce_dice_partials_kernel(%arg0: i32, %arg1: i32, %arg2: memref<1x8x512xf32, #tpu.memory_space<vmem>>, %arg3: memref<1x8x512xf32, #tpu.memory_space<vmem>>, %arg4: memref<1x1x1xf32, #tpu.memory_space<vmem>>, %arg5: memref<1x1x1xf32, #tpu.memory_space<vmem>>, %arg6: memref<1x1x1xf32, #tpu.memory_space<vmem>>, %arg7: memref<1x1x1xf32, #tpu.memory_space<vmem>>, %arg8: memref<1x512xf32, #tpu.memory_space<vmem>>, %arg9: memref<1x512xf32, #tpu.memory_space<vmem>>, %arg10: memref<1x512xf32, #tpu.memory_space<vmem>>, %arg11: memref<1x512xf32, #tpu.memory_space<vmem>>) attributes {dimension_semantics = [#tpu.dimension_semantics<parallel>, #tpu.dimension_semantics<arbitrary>], iteration_bounds = array<i64: 2, 1>, scalar_prefetch = 0 : i64, scratch_operands = 4 : i64, tpu.core_type = #tpu.core_type<tc>, window_params = [{transform_indices = @transform_0, window_bounds = array<i64: 1, 8, 512>}, {transform_indices = @transform_1, window_bounds = array<i64: 1, 8, 512>}, {transform_indices = @transform_2, window_bounds = array<i64: 1, 1, 1>}, {transform_indices = @transform_3, window_bounds = array<i64: 1, 1, 1>}, {transform_indices = @transform_4, window_bounds = array<i64: 1, 1, 1>}, {transform_indices = @transform_5, window_bounds = array<i64: 1, 1, 1>}]} {
    %c0_i32 = arith.constant 0 : i32
    %0 = arith.cmpi eq, %arg1, %c0_i32 : i32
    %1 = arith.extui %0 : i1 to i32
    %c0_i32_0 = arith.constant 0 : i32
    %2 = arith.cmpi ne, %1, %c0_i32_0 : i32
    scf.if %2 {
      %cst_31 = arith.constant 0.000000e+00 : f32
      %44 = vector.broadcast %cst_31 : f32 to vector<1x512xf32>
      %c0_32 = arith.constant 0 : index
      %c0_33 = arith.constant 0 : index
      %45 = vector.load %arg8[%c0_32, %c0_33] : memref<1x512xf32, #tpu.memory_space<vmem>>, vector<1x512xf32>
      tpu.vector_store %arg8[%c0_32, %c0_33], %44 {strides = array<i32>} : memref<1x512xf32, #tpu.memory_space<vmem>>, vector<1x512xf32>,
      %cst_34 = arith.constant 0.000000e+00 : f32
      %46 = vector.broadcast %cst_34 : f32 to vector<1x512xf32>
      %c0_35 = arith.constant 0 : index
      %c0_36 = arith.constant 0 : index
      %47 = vector.load %arg9[%c0_35, %c0_36] : memref<1x512xf32, #tpu.memory_space<vmem>>, vector<1x512xf32>
      tpu.vector_store %arg9[%c0_35, %c0_36], %46 {strides = array<i32>} : memref<1x512xf32, #tpu.memory_space<vmem>>, vector<1x512xf32>,
      %cst_37 = arith.constant 0.000000e+00 : f32
      %48 = vector.broadcast %cst_37 : f32 to vector<1x512xf32>
      %c0_38 = arith.constant 0 : index
      %c0_39 = arith.constant 0 : index
      %49 = vector.load %arg10[%c0_38, %c0_39] : memref<1x512xf32, #tpu.memory_space<vmem>>, vector<1x512xf32>
      tpu.vector_store %arg10[%c0_38, %c0_39], %48 {strides = array<i32>} : memref<1x512xf32, #tpu.memory_space<vmem>>, vector<1x512xf32>,
      %cst_40 = arith.constant 0.000000e+00 : f32
      %50 = vector.broadcast %cst_40 : f32 to vector<1x512xf32>
      %c0_41 = arith.constant 0 : index
      %c0_42 = arith.constant 0 : index
      %51 = vector.load %arg11[%c0_41, %c0_42] : memref<1x512xf32, #tpu.memory_space<vmem>>, vector<1x512xf32>
      tpu.vector_store %arg11[%c0_41, %c0_42], %50 {strides = array<i32>} : memref<1x512xf32, #tpu.memory_space<vmem>>, vector<1x512xf32>,
    } else {
    }
    %c0 = arith.constant 0 : index
    %c0_1 = arith.constant 0 : index
    %c0_2 = arith.constant 0 : index
    %3 = vector.load %arg2[%c0, %c0_1, %c0_2] : memref<1x8x512xf32, #tpu.memory_space<vmem>>, vector<1x8x512xf32>
    %4 = vector.shape_cast %3 : vector<1x8x512xf32> to vector<8x512xf32>
    %c0_3 = arith.constant 0 : index
    %c0_4 = arith.constant 0 : index
    %c0_5 = arith.constant 0 : index
    %5 = vector.load %arg3[%c0_3, %c0_4, %c0_5] : memref<1x8x512xf32, #tpu.memory_space<vmem>>, vector<1x8x512xf32>
    %6 = vector.shape_cast %5 : vector<1x8x512xf32> to vector<8x512xf32>
    %c0_6 = arith.constant 0 : index
    %c0_7 = arith.constant 0 : index
    %7 = vector.load %arg8[%c0_6, %c0_7] : memref<1x512xf32, #tpu.memory_space<vmem>>, vector<1x512xf32>
    %8 = arith.mulf %4, %6 : vector<8x512xf32>
    %cst = arith.constant dense<0.000000e+00> : vector<512xf32>
    %9 = vector.multi_reduction <add>, %8, %cst [0] : vector<8x512xf32> to vector<512xf32>
    %10 = vector.shape_cast %9 : vector<512xf32> to vector<1x512xf32>
    %11 = arith.addf %7, %10 : vector<1x512xf32>
    %c0_8 = arith.constant 0 : index
    %c0_9 = arith.constant 0 : index
    %12 = vector.load %arg8[%c0_8, %c0_9] : memref<1x512xf32, #tpu.memory_space<vmem>>, vector<1x512xf32>
    tpu.vector_store %arg8[%c0_8, %c0_9], %11 {strides = array<i32>} : memref<1x512xf32, #tpu.memory_space<vmem>>, vector<1x512xf32>,
    %c0_10 = arith.constant 0 : index
    %c0_11 = arith.constant 0 : index
    %13 = vector.load %arg9[%c0_10, %c0_11] : memref<1x512xf32, #tpu.memory_space<vmem>>, vector<1x512xf32>
    %cst_12 = arith.constant dense<0.000000e+00> : vector<512xf32>
    %14 = vector.multi_reduction <add>, %6, %cst_12 [0] : vector<8x512xf32> to vector<512xf32>
    %15 = vector.shape_cast %14 : vector<512xf32> to vector<1x512xf32>
    %16 = arith.addf %13, %15 : vector<1x512xf32>
    %c0_13 = arith.constant 0 : index
    %c0_14 = arith.constant 0 : index
    %17 = vector.load %arg9[%c0_13, %c0_14] : memref<1x512xf32, #tpu.memory_space<vmem>>, vector<1x512xf32>
    tpu.vector_store %arg9[%c0_13, %c0_14], %16 {strides = array<i32>} : memref<1x512xf32, #tpu.memory_space<vmem>>, vector<1x512xf32>,
    %c0_15 = arith.constant 0 : index
    %c0_16 = arith.constant 0 : index
    %18 = vector.load %arg10[%c0_15, %c0_16] : memref<1x512xf32, #tpu.memory_space<vmem>>, vector<1x512xf32>
    %cst_17 = arith.constant dense<0.000000e+00> : vector<512xf32>
    %19 = vector.multi_reduction <add>, %4, %cst_17 [0] : vector<8x512xf32> to vector<512xf32>
    %20 = vector.shape_cast %19 : vector<512xf32> to vector<1x512xf32>
    %21 = arith.addf %18, %20 : vector<1x512xf32>
    %c0_18 = arith.constant 0 : index
    %c0_19 = arith.constant 0 : index
    %22 = vector.load %arg10[%c0_18, %c0_19] : memref<1x512xf32, #tpu.memory_space<vmem>>, vector<1x512xf32>
    tpu.vector_store %arg10[%c0_18, %c0_19], %21 {strides = array<i32>} : memref<1x512xf32, #tpu.memory_space<vmem>>, vector<1x512xf32>,
    %23 = math.log %4 : vector<8x512xf32>
    %cst_20 = arith.constant -1.000000e+02 : f32
    %24 = vector.broadcast %cst_20 : f32 to vector<8x512xf32>
    %25 = arith.maximumf %23, %24 : vector<8x512xf32>
    %cst_21 = arith.constant 1.000000e+00 : f32
    %26 = vector.broadcast %cst_21 : f32 to vector<8x512xf32>
    %27 = arith.subf %26, %4 : vector<8x512xf32>
    %28 = math.log %27 : vector<8x512xf32>
    %cst_22 = arith.constant -1.000000e+02 : f32
    %29 = vector.broadcast %cst_22 : f32 to vector<8x512xf32>
    %30 = arith.maximumf %28, %29 : vector<8x512xf32>
    %c0_23 = arith.constant 0 : index
    %c0_24 = arith.constant 0 : index
    %31 = vector.load %arg11[%c0_23, %c0_24] : memref<1x512xf32, #tpu.memory_space<vmem>>, vector<1x512xf32>
    %32 = arith.mulf %6, %25 : vector<8x512xf32>
    %cst_25 = arith.constant 1.000000e+00 : f32
    %33 = vector.broadcast %cst_25 : f32 to vector<8x512xf32>
    %34 = arith.subf %33, %6 : vector<8x512xf32>
    %35 = arith.mulf %34, %30 : vector<8x512xf32>
    %36 = arith.addf %32, %35 : vector<8x512xf32>
    %cst_26 = arith.constant dense<0.000000e+00> : vector<512xf32>
    %37 = vector.multi_reduction <add>, %36, %cst_26 [0] : vector<8x512xf32> to vector<512xf32>
    %38 = vector.shape_cast %37 : vector<512xf32> to vector<1x512xf32>
    %39 = arith.addf %31, %38 : vector<1x512xf32>
    %c0_27 = arith.constant 0 : index
    %c0_28 = arith.constant 0 : index
    %40 = vector.load %arg11[%c0_27, %c0_28] : memref<1x512xf32, #tpu.memory_space<vmem>>, vector<1x512xf32>
    tpu.vector_store %arg11[%c0_27, %c0_28], %39 {strides = array<i32>} : memref<1x512xf32, #tpu.memory_space<vmem>>, vector<1x512xf32>,
    %c0_i32_29 = arith.constant 0 : i32
    %41 = arith.cmpi eq, %arg1, %c0_i32_29 : i32
    %42 = arith.extui %41 : i1 to i32
    %c0_i32_30 = arith.constant 0 : i32
    %43 = arith.cmpi ne, %42, %c0_i32_30 : i32
    scf.if %43 {
      %c0_31 = arith.constant 0 : index
      %c0_32 = arith.constant 0 : index
      %44 = vector.load %arg8[%c0_31, %c0_32] : memref<1x512xf32, #tpu.memory_space<vmem>>, vector<1x512xf32>
      %45 = vector.shape_cast %44 : vector<1x512xf32> to vector<1x1x512xf32>
      %cst_33 = arith.constant dense<0.000000e+00> : vector<1xf32>
      %46 = vector.multi_reduction <add>, %45, %cst_33 [1, 2] : vector<1x1x512xf32> to vector<1xf32>
      %47 = vector.shape_cast %46 : vector<1xf32> to vector<1x1x1xf32>
      %48 = vector.extract %47[0, 0, 0] : f32 from vector<1x1x1xf32>
      %49 = vector.broadcast %48 : f32 to vector<1x1x1xf32>
      %c0_34 = arith.constant 0 : index
      %c0_35 = arith.constant 0 : index
      %c0_36 = arith.constant 0 : index
      %50 = vector.load %arg4[%c0_34, %c0_35, %c0_36] : memref<1x1x1xf32, #tpu.memory_space<vmem>>, vector<1x1x1xf32>
      tpu.vector_store %arg4[%c0_34, %c0_35, %c0_36], %49 {strides = array<i32>} : memref<1x1x1xf32, #tpu.memory_space<vmem>>, vector<1x1x1xf32>,
      %c0_37 = arith.constant 0 : index
      %c0_38 = arith.constant 0 : index
      %51 = vector.load %arg9[%c0_37, %c0_38] : memref<1x512xf32, #tpu.memory_space<vmem>>, vector<1x512xf32>
      %52 = vector.shape_cast %51 : vector<1x512xf32> to vector<1x1x512xf32>
      %cst_39 = arith.constant dense<0.000000e+00> : vector<1xf32>
      %53 = vector.multi_reduction <add>, %52, %cst_39 [1, 2] : vector<1x1x512xf32> to vector<1xf32>
      %54 = vector.shape_cast %53 : vector<1xf32> to vector<1x1x1xf32>
      %55 = vector.extract %54[0, 0, 0] : f32 from vector<1x1x1xf32>
      %56 = vector.broadcast %55 : f32 to vector<1x1x1xf32>
      %c0_40 = arith.constant 0 : index
      %c0_41 = arith.constant 0 : index
      %c0_42 = arith.constant 0 : index
      %57 = vector.load %arg5[%c0_40, %c0_41, %c0_42] : memref<1x1x1xf32, #tpu.memory_space<vmem>>, vector<1x1x1xf32>
      tpu.vector_store %arg5[%c0_40, %c0_41, %c0_42], %56 {strides = array<i32>} : memref<1x1x1xf32, #tpu.memory_space<vmem>>, vector<1x1x1xf32>,
      %c0_43 = arith.constant 0 : index
      %c0_44 = arith.constant 0 : index
      %58 = vector.load %arg10[%c0_43, %c0_44] : memref<1x512xf32, #tpu.memory_space<vmem>>, vector<1x512xf32>
      %59 = vector.shape_cast %58 : vector<1x512xf32> to vector<1x1x512xf32>
      %cst_45 = arith.constant dense<0.000000e+00> : vector<1xf32>
      %60 = vector.multi_reduction <add>, %59, %cst_45 [1, 2] : vector<1x1x512xf32> to vector<1xf32>
      %61 = vector.shape_cast %60 : vector<1xf32> to vector<1x1x1xf32>
      %62 = vector.extract %61[0, 0, 0] : f32 from vector<1x1x1xf32>
      %63 = vector.broadcast %62 : f32 to vector<1x1x1xf32>
      %c0_46 = arith.constant 0 : index
      %c0_47 = arith.constant 0 : index
      %c0_48 = arith.constant 0 : index
      %64 = vector.load %arg6[%c0_46, %c0_47, %c0_48] : memref<1x1x1xf32, #tpu.memory_space<vmem>>, vector<1x1x1xf32>
      tpu.vector_store %arg6[%c0_46, %c0_47, %c0_48], %63 {strides = array<i32>} : memref<1x1x1xf32, #tpu.memory_space<vmem>>, vector<1x1x1xf32>,
      %c0_49 = arith.constant 0 : index
      %c0_50 = arith.constant 0 : index
      %65 = vector.load %arg11[%c0_49, %c0_50] : memref<1x512xf32, #tpu.memory_space<vmem>>, vector<1x512xf32>
      %66 = vector.shape_cast %65 : vector<1x512xf32> to vector<1x1x512xf32>
      %cst_51 = arith.constant dense<0.000000e+00> : vector<1xf32>
      %67 = vector.multi_reduction <add>, %66, %cst_51 [1, 2] : vector<1x1x512xf32> to vector<1xf32>
      %68 = vector.shape_cast %67 : vector<1xf32> to vector<1x1x1xf32>
      %69 = vector.extract %68[0, 0, 0] : f32 from vector<1x1x1xf32>
      %70 = vector.broadcast %69 : f32 to vector<1x1x1xf32>
      %c0_52 = arith.constant 0 : index
      %c0_53 = arith.constant 0 : index
      %c0_54 = arith.constant 0 : index
      %71 = vector.load %arg7[%c0_52, %c0_53, %c0_54] : memref<1x1x1xf32, #tpu.memory_space<vmem>>, vector<1x1x1xf32>
      tpu.vector_store %arg7[%c0_52, %c0_53, %c0_54], %70 {strides = array<i32>} : memref<1x1x1xf32, #tpu.memory_space<vmem>>, vector<1x1x1xf32>,
    } else {
    }
    return
  }
  func.func @transform_0(%arg0: i32, %arg1: i32) -> (i32, i32, i32) {
    %c0_i32 = arith.constant 0 : i32
    %c0_i32_0 = arith.constant 0 : i32
    return %arg0, %arg1, %c0_i32 : i32, i32, i32
  }
  func.func @transform_1(%arg0: i32, %arg1: i32) -> (i32, i32, i32) {
    %c0_i32 = arith.constant 0 : i32
    %c0_i32_0 = arith.constant 0 : i32
    return %arg0, %arg1, %c0_i32 : i32, i32, i32
  }
  func.func @transform_2(%arg0: i32, %arg1: i32) -> (i32, i32, i32) {
    %c0_i32 = arith.constant 0 : i32
    %c0_i32_0 = arith.constant 0 : i32
    %c0_i32_1 = arith.constant 0 : i32
    return %arg0, %c0_i32, %c0_i32_0 : i32, i32, i32
  }
  func.func @transform_3(%arg0: i32, %arg1: i32) -> (i32, i32, i32) {
    %c0_i32 = arith.constant 0 : i32
    %c0_i32_0 = arith.constant 0 : i32
    %c0_i32_1 = arith.constant 0 : i32
    return %arg0, %c0_i32, %c0_i32_0 : i32, i32, i32
  }
  func.func @transform_4(%arg0: i32, %arg1: i32) -> (i32, i32, i32) {
    %c0_i32 = arith.constant 0 : i32
    %c0_i32_0 = arith.constant 0 : i32
    %c0_i32_1 = arith.constant 0 : i32
    return %arg0, %c0_i32, %c0_i32_0 : i32, i32, i32
  }
  func.func @transform_5(%arg0: i32, %arg1: i32) -> (i32, i32, i32) {
    %c0_i32 = arith.constant 0 : i32
    %c0_i32_0 = arith.constant 0 : i32
    %c0_i32_1 = arith.constant 0 : i32
    return %arg0, %c0_i32, %c0_i32_0 : i32, i32, i32
  }
}

</mosaic_0001>

<bundles_post_ra>
// kernel: tpu_custom_call.1
= control target key start
LH: loop header
LB: loop body
LE: loop exit
PB: predicated region body
PF: predicated region fallthrough
CT: control target
= control target key end

     0   :  { %11 = vsyncpa [#allocation7], 0  ;;  %s1525_s0 = inlined_call_operand.hbm [shape: f32[2,8,512], index: 0, kind: input, shape index: {}]   ;;  %s1526_s1 = inlined_call_operand.hbm [shape: f32[2,8,512], index: 1, kind: input, shape index: {}]   ;;  %s1527_s2 = inlined_call_operand.vmem [shape: f32[2,1,1], index: 2, kind: output, shape index: {0}]   ;;  %s1528_s3 = inlined_call_operand.vmem [shape: f32[2,1,1], index: 3, kind: output, shape index: {1}]   ;;  %s1529_s4 = inlined_call_operand.vmem [shape: f32[2,1,1], index: 4, kind: output, shape index: {2}]   ;;  %s1530_s5 = inlined_call_operand.vmem [shape: f32[2,1,1], index: 5, kind: output, shape index: {3}]  }
   0x1   :  { %13 = vsyncpa [#allocation7 + $0x1], 0 }
   0x2   :  { %14 = vsyncpa [#allocation9], 0 }
   0x3   :  { %16 = vsyncpa [#allocation9 + $0x1], 0  ;;  %s1207_s18 = smov 0   ;;  %s1209_s19 = smov 0  }
   0x4   :  { %s1211_s20 = smov 0   ;;  %s1213_s21 = smov 0  }
   0x5   :  { %s1215_s22 = smov 0   ;;  %s1217_s23 = smov 0  }
   0x6 LB: > { %s954_s24 = sadd.s32 4294967295, %s1171_s23   ;;  %s34_s25 = sadd.s32 1, %s1167_s22  ;;  %s1171_s23 = sphi %s1217_s23, %s22_s23   ;;  %s1167_s22 = sphi %s1215_s22, %s1546_s22   ;;  %s1163_s21 = sphi %s1213_s21, %s1545_s21   ;;  %s1159_s20 = sphi %s1211_s20, %s1544_s20   ;;  %s1155_s19 = sphi %s1209_s19, %s1543_s19   ;;  %s1151_s18 = sphi %s1207_s18, %s1542_s18  }
   0x7   : > { %p36_p0 = scmp.ge.s32.totalorder %s34_s25, 2  ;;  %s43_s26 = sadd.s32 1, %s1159_s20 }
   0x8   : > { %p50_p1 = scmp.ne.s32.totalorder %s1159_s20, %s1155_s19  ;;  %p51_p2 = scmp.eq.s32.totalorder %s1171_s23, 0 }
   0x9   : > { %s1548_s25 = smov (%p36_p0, %s34_s25), 0  ;;  %p56_p4 = scmp.ne.s32.totalorder %s1155_s19, %s1151_s18 }
   0xa   : > { %p1243_p3 = por %p51_p2, %p50_p1  ;;  %s38_s28 = ssub.s32 %s1167_s22, %s1548_s25 }
   0xb   : > { %p57_p5 = scmp.eq.s32.totalorder %s954_s24, 0  ;;  %p41_p6 = scmp.eq.s32.totalorder %s38_s28, 0 }
   0xc   : > { %p990_p8 = scmp.lt.s32.totalorder %s1171_s23, 2  ;;  %s1259_s6 = sand.u32 1, %s1159_s20  }
   0xd   : > { %p1250_p7 = por %p57_p5, %p56_p4  ;;  %s969_s7 = sshll.u32 %s1167_s22, 9 }
   0xe   : > { %s1256_s30 = scalar_select %p41_p6, %s1159_s20, %s43_s26  }
   0xf   : > { %s1533_s29 = scalar_select %p1250_p7, 1, 0 }
  0x10   : > { %s958_s8 = sshll.u32 %s1259_s6, 5  ;;  %s1268_s11 = scalar_lea.hbm %s1525_s0, %s969_s7 }
  0x11   : > { %s216_s12 = scalar_lea.vmem [#allocation6], %s958_s8  ;;  %p1274_p9 = pnand %p990_p8, %p1243_p3 }
  0x12   : > { %s226_s13 = sshll.u32 %s216_s12, 4  ;;  %s213_s15 = scalar_lea.sflag [#allocation7], %s1259_s6  ;;  %s1278_s13 = int_to_ptr.vmem [resolvable:$true] %s226_s13 }
  0x13   : > { %s1057_s16 = scalar_lea.hbm %s1268_s11, 512  ;;  %p1059_p13 = pneg %p1274_p9 }
  0x14   : > { %p1058_p12 = scmp.ne.s32.totalorder %s1268_s11, %s1057_s16  ;;  %s1062_s24 = scalar_lea.hbm %s1525_s0, 1024 }
  0x15   : > { %p1063_p2 = scmp.lt.u32.totalorder %s1268_s11, %s1525_s0  ;;  %p1064_p3 = scmp.lt.u32.totalorder %s1062_s24, %s1057_s16 }
  0x16   : > { %p1060_p0 = pnand %p1059_p13, %p1058_p12  ;;  %p1066_p5 = scmp.lt.u32.totalorder %s1057_s16, %s1268_s11 }
  0x17   : > { %p1065_p4 = por %p1064_p3, %p1063_p2 }
  0x18   : > { %p1061_p1 = pneg %p1060_p0 }
  0x19   : > { %p1067_p6 = por %p1066_p5, %p1065_p4 }
  0x1b   : > { %p1068_p8 = pnand %p1067_p6, %p1061_p1 }
  0x1d   : > { %1071 = shalt.err (!%p1068_p8)
}
  0x1e   : > { %s1072_s28 = scalar_lea.vmem %s1278_s13, 512  ;;  %s1173_s9 = smov [#allocation6]  }
  0x1f   : > { %p1073_p12 = scmp.ne.s32.totalorder %s1278_s13, %s1072_s28  ;;  %s1077_s10 = sshll.u32 %s1173_s9, 4  ;;  %s1078_s10 = int_to_ptr.vmem [resolvable:$false] %s1077_s10 }
  0x20   : > { %s1079_s12 = scalar_lea.vmem %s1078_s10, 1024  ;;  %p1080_p11 = scmp.lt.s32.totalorder %s1278_s13, %s1078_s10 }
  0x21   : > { %p1075_p0 = pnand %p1073_p12, %p1059_p13  ;;  %p1081_p2 = scmp.lt.s32.totalorder %s1079_s12, %s1072_s28 }
  0x23   : > { %p1076_p10 = pneg %p1075_p0  ;;  %p1082_p3 = por %p1081_p2, %p1080_p11 }
  0x25   : > { %p1083_p4 = pnand %p1082_p3, %p1076_p10 }
  0x27   : > { %1086 = shalt.err (!%p1083_p4)
}
  0x28   : > { %986 = dma.hbm_to_vmem [thread:$0]  (!%p1274_p9), %s1268_s11, 512, %s1278_s13, %s213_s15  }
  0x29   : > { %p1535_p1 = scmp.lt.s32.totalorder %s1171_s23, 3  ;;  %p1536_p5 = scmp.ge.s32.totalorder %s1171_s23, 1 }
  0x2a   : > { %s1321_s24 = scalar_lea.hbm %s1526_s1, %s969_s7  ;;  %s237_s26 = scalar_lea.vmem [#allocation8], %s958_s8 }
  0x2b   : > { %p1312_p6 = pnand %p1536_p5, %p1535_p1  ;;  %s247_s27 = sshll.u32 %s237_s26, 4  ;;  %s248_s27 = int_to_ptr.vmem [resolvable:$true] %s247_s27 }
  0x2c   : > { %s234_s11 = scalar_lea.sflag [#allocation9], %s1259_s6  ;;  %s1087_s13 = scalar_lea.hbm %s1321_s24, 512 }
  0x2d   : > { %s1537_s16 = scalar_select %p1312_p6, 1, 0 }
  0x2e   : > { %p1088_p10 = scmp.ne.s32.totalorder %s1321_s24, %s1087_s13  ;;  %s1092_s7 = scalar_lea.hbm %s1526_s1, 1024 }
  0x2f   : > { %p1093_p12 = scmp.lt.u32.totalorder %s1321_s24, %s1526_s1  ;;  %p1094_p0 = scmp.lt.u32.totalorder %s1092_s7, %s1087_s13 }
  0x30   : > { %p1090_p11 = pnand %p1088_p10, %p1059_p13  ;;  %p1096_p3 = scmp.lt.u32.totalorder %s1087_s13, %s1321_s24 }
  0x31   : > { %p1095_p2 = por %p1094_p0, %p1093_p12 }
  0x32   : > { %p1091_p8 = pneg %p1090_p11 }
  0x33   : > { %p1097_p4 = por %p1096_p3, %p1095_p2 }
  0x35   : > { %p1098_p1 = pnand %p1097_p4, %p1091_p8 }
  0x37   : > { %1101 = shalt.err (!%p1098_p1)
}
  0x38   : > { %s1102_s6 = scalar_lea.vmem %s248_s27, 512  ;;  %s1174_s8 = smov [#allocation8]  }
  0x39   : > { %p1103_p5 = scmp.ne.s32.totalorder %s248_s27, %s1102_s6  ;;  %s1107_s12 = sshll.u32 %s1174_s8, 4  ;;  %s1108_s12 = int_to_ptr.vmem [resolvable:$false] %s1107_s12 }
  0x3a   : > { %s1109_s17 = scalar_lea.vmem %s1108_s12, 1024  ;;  %p1110_p7 = scmp.lt.s32.totalorder %s248_s27, %s1108_s12 }
  0x3b   : > { %p1105_p10 = pnand %p1103_p5, %p1059_p13  ;;  %p1111_p6 = scmp.lt.s32.totalorder %s1109_s17, %s1102_s6 }
  0x3d   : > { %p1106_p11 = pneg %p1105_p10  ;;  %p1112_p0 = por %p1111_p6, %p1110_p7 }
  0x3f   : > { %p1113_p12 = pnand %p1112_p0, %p1106_p11 }
  0x41   : > { %1116 = shalt.err (!%p1113_p12)
}
  0x42   : > { %989 = dma.hbm_to_vmem [thread:$0]  (!%p1274_p9), %s1321_s24, 512, %s248_s27, %s234_s11  }
  0x43   : > { %p1538_p8 = scmp.ne.s32.totalorder %s1537_s16, 0 }
  0x44   : > { %s258_s18 = sand.u32 (!%p1538_p8), 1, %s1155_s19   ;;  %p1539_p13 = scmp.ne.s32.totalorder (!%p1538_p8), %s1533_s29, 0 }
  0x45   : > { %256 = sbr.rel (%p1538_p8) target bundleno = 373 (0x175), region = 28  ;;  %s965_s26 = sshll.u32 (!%p1538_p8), %s258_s18, 5 }
  0x46   : > { %s259_s13 = scalar_lea.sflag (!%p1538_p8), [#allocation7], %s258_s18  ;;  %s262_s15 = scalar_lea.vmem (!%p1538_p8), [#allocation6], %s965_s26 }
  0x4c   : > { %1142 = dma.done.wait (%p1539_p13), %s259_s13, 512  }
  0x4d   : > { %1144 = vsyncadd (%p1539_p13), %s259_s13, 4294966784  ;;  %s268_s28 = scalar_lea.sflag [#allocation9], %s258_s18  ;;  %s271_s7 = scalar_lea.vmem [#allocation8], %s965_s26 }
  0x4e   : > { %1146 = dma.done.wait (%p1539_p13), %s268_s28, 512  }
  0x4f   : > { %1148 = vsyncadd (%p1539_p13), %s268_s28, 4294966784  ;;  %v326_v0 = vlaneseq  ;;  %v1175_v1 = vmov 1966171168   ;;  %v1176_v4 = vmov 0.0   ;;  %v1370_v7 = vld [vmem:[%s262_s15] sm:$0xff]  ;;  %v1372_v8 = vld [vmem:[%s262_s15 + $0x8] sm:$0xff] }
  0x50   : > { %v378_v2 = vunpack.c.l.s4 %v1175_v1  ;;  %v1374_v9 = vld [vmem:[%s262_s15 + $0x10] sm:$0xff]  ;;  %v1379_v11 = vld [vmem:[%s262_s15 + $0x18] sm:$0xff]  ;;  %v1381_v12 = vld [vmem:[%s271_s7] sm:$0xff]  ;;  %v463_v14 = vrot.slane %v1370_v7, 4  ;;  %v469_v15 = vrot.slane %v1372_v8, 4  ;;  %1041 = vlog2.f32 %v1370_v7  ;;  %p310_p7 = scmp.lt.s32.totalorder %s1163_s21, 1 }
  0x51   : > { %vm1356_vm0 = vcmp.lt.s32.totalorder %v326_v0, 512  ;;  %v1368_v6 = vshrl.u32 %v326_v0, 7  ;;  %v1383_v13 = vld [vmem:[%s271_s7 + $0x8] sm:$0xff]  ;;  %v475_v16 = vrot.slane %v1374_v9, 4  ;;  %v1389_v17 = vld [vmem:[%s271_s7 + $0x10] sm:$0xff]  ;;  %v1391_v18 = vld [vmem:[%s271_s7 + $0x18] sm:$0xff]  ;;  %v343_v19 = vmul.f32 %v1381_v12, %v1370_v7 }
  0x52   : > { %330 = vst.msk [vmem:[#allocation2] sm:$0xf] %vm1356_vm0, %v1176_v4  ;;  %331 = vst.msk [vmem:[#allocation3] sm:$0xf] %vm1356_vm0, %v1176_v4  ;;  %v379_v5 = vunpack.c.0.s8 %v378_v2  ;;  %v344_v20 = vmul.f32 %v1383_v13, %v1372_v8  ;;  %v481_v21 = vrot.slane %v1379_v11, 4  ;;  %v407_v22 = vrot.slane %v1381_v12, 4 }
  0x53   : > { %332 = vst.msk [vmem:[#allocation4] sm:$0xf] %vm1356_vm0, %v1176_v4  ;;  %333 = vst.msk [vmem:[#allocation5] sm:$0xf] %vm1356_vm0, %v1176_v4  ;;  %v345_v23 = vmul.f32 %v1389_v17, %v1374_v9  ;;  %v346_v24 = vmul.f32 %v1391_v18, %v1379_v11  ;;  %v464_v25 = vadd.f32 %v463_v14, %v1370_v7  ;;  %v347_v27 = vrot.slane %v343_v19, 4  ;;  %s1550_s21 = smov (!%p310_p7, %s1163_s21), 1 }
  0x54   : > { %v1377_v10 = vsub.s32 %v379_v5, %v1368_v6  ;;  %v470_v26 = vadd.f32 %v469_v15, %v1372_v8  ;;  %v353_v28 = vrot.slane %v344_v20, 4  ;;  %v476_v29 = vadd.f32 %v475_v16, %v1374_v9  ;;  %s312_s16 = scalar_lea.vmem %s1527_s2, %s1550_s21  ;;  %s315_s9 = scalar_lea.vmem %s1528_s3, %s1550_s21 }
  0x55   : > { %v482_v30 = vadd.f32 %v481_v21, %v1379_v11  ;;  %v359_v31 = vrot.slane %v345_v23, 4  ;;  %v365_v32 = vrot.slane %v346_v24, 4  ;;  %v465_v33 = vrot.slane %v464_v25, 2  ;;  %s318_s12 = scalar_lea.vmem %s1529_s4, %s1550_s21  ;;  %s321_s13 = scalar_lea.vmem %s1530_s5, %s1550_s21 }
  0x56   : > { %v471_v34 = vrot.slane %v470_v26, 2  ;;  %v348_v35 = vadd.f32 %v347_v27, %v343_v19  ;;  %v354_v36 = vadd.f32 %v353_v28, %v344_v20  ;;  %v477_v37 = vrot.slane %v476_v29, 2 }
  0x57   : > { %v483_v38 = vrot.slane %v482_v30, 2  ;;  %v360_v39 = vadd.f32 %v359_v31, %v345_v23  ;;  %v366_v40 = vadd.f32 %v365_v32, %v346_v24  ;;  %v466_v41 = vadd.f32 %v465_v33, %v464_v25 }
  0x58   : > { %v472_v42 = vadd.f32 %v471_v34, %v470_v26  ;;  %v349_v43 = vrot.slane %v348_v35, 2  ;;  %v355_v44 = vrot.slane %v354_v36, 2  ;;  %v478_v45 = vadd.f32 %v477_v37, %v476_v29 }
  0x59   : > { %v484_v46 = vadd.f32 %v483_v38, %v482_v30  ;;  %v361_v47 = vrot.slane %v360_v39, 2  ;;  %v367_v48 = vrot.slane %v366_v40, 2  ;;  %v467_v49 = vrot.slane %v466_v41, 1 }
  0x5a   : > { %v473_v50 = vrot.slane %v472_v42, 1  ;;  %v350_v51 = vadd.f32 %v349_v43, %v348_v35  ;;  %v356_v52 = vadd.f32 %v355_v44, %v354_v36  ;;  %v479_v53 = vrot.slane %v478_v45, 1  ;;  %v1042_v55 = vpop.eup %1041  ;;  %v462_v35 = vld [vmem:[#allocation4] sm:$0xf]  ;;  %v342_v44 = vld [vmem:[#allocation2] sm:$0xf] }
  0x5b   : > { %v485_v54 = vrot.slane %v484_v46, 1  ;;  %v362_v56 = vadd.f32 %v361_v47, %v360_v39  ;;  %v368_v57 = vadd.f32 %v367_v48, %v366_v40  ;;  %v468_v58 = vadd.f32 %v467_v49, %v466_v41 }
  0x5c   : > { %v474_v59 = vadd.f32 %v473_v50, %v472_v42  ;;  %v351_v60 = vrot.slane %v350_v51, 1  ;;  %v357_v61 = vrot.slane %v356_v52, 1  ;;  %v480_v62 = vadd.f32 %v479_v53, %v478_v45 }
  0x5d   : > { %v486_v63 = vadd.f32 %v485_v54, %v484_v46  ;;  %v363_v0 = vrot.slane %v362_v56, 1  ;;  %v369_v1 = vrot.slane %v368_v57, 1  ;;  %v408_v4 = vadd.f32 %v407_v22, %v1381_v12 }
  0x5e   : > { %v491_v2 = vcombine.low %v468_v58, %v474_v59  ;;  %v352_v5 = vadd.f32 %v351_v60, %v350_v51  ;;  %v358_v14 = vadd.f32 %v357_v61, %v356_v52  ;;  %v413_v16 = vrot.slane %v1383_v13, 4 }
  0x5f   : > { %v492_v15 = vcombine.low %v480_v62, %v486_v63  ;;  %v364_v19 = vadd.f32 %v363_v0, %v362_v56  ;;  %v370_v20 = vadd.f32 %v369_v1, %v368_v57  ;;  %v409_v23 = vrot.slane %v408_v4, 2 }
  0x60   : > { %v499_v21 = vrot.slane %v491_v2, %v1377_v10  ;;  %v375_v24 = vcombine.low %v352_v5, %v358_v14  ;;  %v414_v26 = vadd.f32 %v413_v16, %v1383_v13  ;;  %v419_v27 = vrot.slane %v1389_v17, 4 }
  0x61   : > { %v506_v25 = vrot.slane %v492_v15, %v1377_v10  ;;  %v376_v28 = vcombine.low %v364_v19, %v370_v20  ;;  %v410_v29 = vadd.f32 %v409_v23, %v408_v4  ;;  %v425_v22 = vrot.slane %v1391_v18, 4 }
  0x62   : > { %v383_v30 = vrot.slane %v375_v24, %v1377_v10  ;;  %v415_v32 = vrot.slane %v414_v26, 2  ;;  %v420_v33 = vadd.f32 %v419_v27, %v1389_v17  ;;  %1043 = vlog2.f32 %v1372_v8 }
  0x63   : > { %v507_v31 = vcombine.low %v499_v21, %v506_v25  ;;  %v390_v34 = vrot.slane %v376_v28, %v1377_v10  ;;  %v411_v36 = vrot.slane %v410_v29, 1  ;;  %v426_v37 = vadd.f32 %v425_v22, %v1391_v18 }
  0x64   : > { %v416_v39 = vadd.f32 %v415_v32, %v414_v26  ;;  %v421_v40 = vrot.slane %v420_v33, 2  ;;  %1045 = vlog2.f32 %v1374_v9  ;;  %v519_v43 = vmul.f32 0.6931472, %v1042_v55 }
  0x65   : > { %v514_v38 = vrot.slane %v507_v31, %v1377_v10  ;;  %v391_v41 = vcombine.low %v383_v30, %v390_v34  ;;  %v427_v42 = vrot.slane %v426_v37, 2  ;;  %1047 = vlog2.f32 %v1379_v11 }
  0x66   : > { %v412_v46 = vadd.f32 %v411_v36, %v410_v29  ;;  %v417_v47 = vrot.slane %v416_v39, 1  ;;  %v422_v48 = vadd.f32 %v421_v40, %v420_v33  ;;  %v530_v51 = vsub.f32 1.0, %v1370_v7  ;;  %v406_v40 = vld [vmem:[#allocation3] sm:$0xf] }
  0x67   : > { %v516_v45 = vadd.f32 %v514_v38, %v462_v35  ;;  %v398_v49 = vrot.slane %v391_v41, %v1377_v10  ;;  %v428_v50 = vadd.f32 %v427_v42, %v426_v37  ;;  %v531_v52 = vsub.f32 1.0, %v1372_v8 }
  0x68   : > { %v418_v53 = vadd.f32 %v417_v47, %v416_v39  ;;  %v423_v54 = vrot.slane %v422_v48, 1  ;;  %v532_v55 = vsub.f32 1.0, %v1374_v9  ;;  %v533_v56 = vsub.f32 1.0, %v1379_v11 }
  0x69   : > { %517 = vst.msk [vmem:[#allocation4] sm:$0xf] %vm1356_vm0, %v516_v45  ;;  %v400_v57 = vadd.f32 %v398_v49, %v342_v44  ;;  %v429_v58 = vrot.slane %v428_v50, 1  ;;  %1049 = vlog2.f32 %v530_v51  ;;  %v526_v61 = vmax.f32 %v519_v43, -100.0 }
  0x6a   : > { %v424_v59 = vadd.f32 %v423_v54, %v422_v48  ;;  %v435_v60 = vcombine.low %v412_v46, %v418_v53  ;;  %1051 = vlog2.f32 %v531_v52  ;;  %v1432_v8 = vsub.s32 0, %v1368_v6 }
  0x6b   : > { %405 = vst.msk [vmem:[#allocation2] sm:$0xf] %vm1356_vm0, %v400_v57  ;;  %v430_v7 = vadd.f32 %v429_v58, %v428_v50  ;;  %1053 = vlog2.f32 %v532_v55  ;;  %v1435_v62 = vsub.s32 1, %v1368_v6  ;;  %vm643_vm1 = vcmask 1040384  }
  0x6c   : > { %1055 = vlog2.f32 %v533_v56  ;;  %v1044_v9 = vpop.eup %1043  ;;  %v1438_v11 = vsub.s32 2, %v1368_v6  ;;  %v1441_v63 = vsub.s32 3, %v1368_v6  ;;  %v443_v1 = vrot.slane %v435_v60, %v1377_v10 }
  0x6d   : > { %v436_v0 = vcombine.low %v424_v59, %v430_v7  ;;  %v521_v4 = vmul.f32 0.6931472, %v1044_v9  ;;  %v547_v5 = vmul.f32 %v526_v61, %v1381_v12  ;;  %v551_v14 = vsub.f32 1.0, %v1381_v12 }
  0x6e   : > { %v1046_v2 = vpop.eup %1045  ;;  %v552_v15 = vsub.f32 1.0, %v1383_v13  ;;  %v553_v23 = vsub.f32 1.0, %v1389_v17  ;;  %v554_v6 = vsub.f32 1.0, %v1391_v18  ;;  %vm661_vm2 = vcmask 0  }
  0x6f   : > { %v1048_v16 = vpop.eup %1047  ;;  %v450_v20 = vrot.slane %v436_v0, %v1377_v10  ;;  %v523_v21 = vmul.f32 0.6931472, %v1046_v2  ;;  %v527_v29 = vmax.f32 %v521_v4, -100.0 }
  0x70   : > { %v703_v19 = vld [vmem:[#allocation4] sm:$0xf]  ;;  %v525_v28 = vmul.f32 0.6931472, %v1048_v16 }
  0x71   : > { %v708_v24 = vrot.slane %v703_v19, %v1432_v8  ;;  %v712_v25 = vrot.slane %v703_v19, %v1435_v62  ;;  %v716_v26 = vrot.slane %v703_v19, %v1438_v11  ;;  %v720_v27 = vrot.slane %v703_v19, %v1441_v63 }
  0x72   : > { %v451_v12 = vcombine.low %v443_v1, %v450_v20  ;;  %v528_v22 = vmax.f32 %v523_v21, -100.0  ;;  %v621_v30 = vld [vmem:[#allocation2] sm:$0xf]  ;;  %v529_v44 = vmax.f32 %v525_v28, -100.0  ;;  %v548_v59 = vmul.f32 %v527_v29, %v1383_v13 }
  0x73   : > { %v725_v31 = vsel %vm643_vm1, %v708_v24, 0.0  ;;  %v726_v32 = vsel %vm643_vm1, %v712_v25, 0.0  ;;  %v728_v33 = vsel %vm643_vm1, %v716_v26, 0.0  ;;  %v730_v34 = vsel %vm643_vm1, %v720_v27, 0.0  ;;  %v1050_v35 = vpop.eup %1049 }
  0x74   : > { %v626_v36 = vrot.slane %v621_v30, %v1432_v8  ;;  %v630_v37 = vrot.slane %v621_v30, %v1435_v62  ;;  %v634_v38 = vrot.slane %v621_v30, %v1438_v11  ;;  %v638_v39 = vrot.slane %v621_v30, %v1441_v63  ;;  %v1052_v41 = vpop.eup %1051 }
  0x75   : > { %v727_v42 = vadd.f32 %v726_v32, %v725_v31  ;;  %v458_v43 = vrot.slane %v451_v12, %v1377_v10  ;;  %v535_v45 = vmul.f32 0.6931472, %v1050_v35  ;;  %v1054_v46 = vpop.eup %1053  ;;  %v537_v55 = vmul.f32 0.6931472, %v1052_v41 }
  0x76   : > { %v644_v47 = vsel %vm643_vm1, %v626_v36, 0.0  ;;  %v645_v48 = vsel %vm643_vm1, %v630_v37, 0.0  ;;  %v647_v49 = vsel %vm643_vm1, %v634_v38, 0.0  ;;  %v649_v50 = vsel %vm643_vm1, %v638_v39, 0.0  ;;  %v1056_v51 = vpop.eup %1055 }
  0x77   : > { %v646_v52 = vadd.f32 %v645_v48, %v644_v47  ;;  %v729_v53 = vadd.f32 %v728_v33, %v727_v42  ;;  %v460_v54 = vadd.f32 %v458_v43, %v406_v40  ;;  %v539_v56 = vmul.f32 0.6931472, %v1054_v46 }
  0x78   : > { %v541_v57 = vmul.f32 0.6931472, %v1056_v51  ;;  %v542_v58 = vmax.f32 %v535_v45, -100.0  ;;  %v543_v7 = vmax.f32 %v537_v55, -100.0  ;;  %v549_v9 = vmul.f32 %v528_v22, %v1389_v17 }
  0x79   : > { %v648_v60 = vadd.f32 %v647_v49, %v646_v52  ;;  %v731_v61 = vadd.f32 %v730_v34, %v729_v53  ;;  %461 = vst.msk [vmem:[#allocation3] sm:$0xf] %vm1356_vm0, %v460_v54  ;;  %v544_v0 = vmax.f32 %v539_v56, -100.0  ;;  %v550_v2 = vmul.f32 %v529_v44, %v1391_v18 }
  0x7a   : > { %v545_v1 = vmax.f32 %v541_v57, -100.0  ;;  %v555_v4 = vmul.f32 %v551_v14, %v542_v58  ;;  %v556_v19 = vmul.f32 %v552_v15, %v543_v7 }
  0x7b   : > { %v650_v16 = vadd.f32 %v649_v50, %v648_v60  ;;  %732 = vadd.xlane.f32.xlu1 %v731_v61  ;;  %v557_v20 = vmul.f32 %v553_v23, %v544_v0 }
  0x7c   : > { %v558_v21 = vmul.f32 %v554_v6, %v545_v1  ;;  %v559_v24 = vadd.f32 %v555_v4, %v547_v5  ;;  %v560_v13 = vadd.f32 %v556_v19, %v548_v59  ;;  %v546_v59 = vld [vmem:[#allocation5] sm:$0xf] }
  0x7d   : > { %651 = vadd.xlane.f32.xlu0 %v650_v16  ;;  %v561_v25 = vadd.f32 %v557_v20, %v549_v9 }
  0x7e   : > { %v562_v26 = vadd.f32 %v558_v21, %v550_v2  ;;  %v563_v27 = vrot.slane %v559_v24, 4  ;;  %v569_v12 = vrot.slane %v560_v13, 4 }
  0x7f   : > { %v575_v17 = vrot.slane %v561_v25, 4 }
  0x80   : > { %v663_v28 = vld [vmem:[#allocation3] sm:$0xf]  ;;  %v564_v29 = vadd.f32 %v563_v27, %v559_v24  ;;  %v581_v22 = vrot.slane %v562_v26, 4  ;;  %v570_v5 = vadd.f32 %v569_v12, %v560_v13 }
  0x81   : > { %v668_v30 = vrot.slane %v663_v28, %v1432_v8  ;;  %v672_v18 = vrot.slane %v663_v28, %v1435_v62  ;;  %v676_v14 = vrot.slane %v663_v28, %v1438_v11  ;;  %v680_v15 = vrot.slane %v663_v28, %v1441_v63 }
  0x82   : > { %v565_v23 = vrot.slane %v564_v29, 2  ;;  %v576_v6 = vadd.f32 %v575_v17, %v561_v25  ;;  %v582_v31 = vadd.f32 %v581_v22, %v562_v26  ;;  %v571_v37 = vrot.slane %v570_v5, 2 }
  0x83   : > { %v685_v32 = vsel %vm643_vm1, %v668_v30, 0.0  ;;  %v686_v33 = vsel %vm643_vm1, %v672_v18, 0.0  ;;  %v688_v34 = vsel %vm643_vm1, %v676_v14, 0.0  ;;  %v690_v39 = vsel %vm643_vm1, %v680_v15, 0.0 }
  0x84   : > { %v687_v35 = vadd.f32 %v686_v33, %v685_v32  ;;  %v566_v36 = vadd.f32 %v565_v23, %v564_v29  ;;  %v577_v38 = vrot.slane %v576_v6, 2  ;;  %v583_v40 = vrot.slane %v582_v31, 2 }
  0x85   : > { %v572_v43 = vadd.f32 %v571_v37, %v570_v5 }
  0x86   : > { %v689_v41 = vadd.f32 %v688_v34, %v687_v35  ;;  %v567_v42 = vrot.slane %v566_v36, 1  ;;  %v578_v44 = vadd.f32 %v577_v38, %v576_v6  ;;  %v584_v45 = vadd.f32 %v583_v40, %v582_v31 }
  0x87   : > { %v573_v48 = vrot.slane %v572_v43, 1 }
  0x88   : > { %v691_v46 = vadd.f32 %v690_v39, %v689_v41  ;;  %v568_v47 = vadd.f32 %v567_v42, %v566_v36  ;;  %v579_v49 = vrot.slane %v578_v44, 1  ;;  %v585_v50 = vrot.slane %v584_v45, 1 }
  0x89   : > { %v574_v51 = vadd.f32 %v573_v48, %v572_v43 }
  0x8a   : > { %692 = vadd.xlane.f32.xlu0 %v691_v46  ;;  %v580_v52 = vadd.f32 %v579_v49, %v578_v44  ;;  %v586_v53 = vadd.f32 %v585_v50, %v584_v45 }
  0x8b   : > { %v591_v54 = vcombine.low %v568_v47, %v574_v51 }
  0x8c   : > { %v592_v55 = vcombine.low %v580_v52, %v586_v53 }
  0x8d   : > { %v599_v56 = vrot.slane %v591_v54, %v1377_v10 }
  0x8e   : > { %v606_v57 = vrot.slane %v592_v55, %v1377_v10 }
  0x90   : > { %v607_v58 = vcombine.low %v599_v56, %v606_v57 }
  0x92   : > { %v614_v60 = vrot.slane %v607_v58, %v1377_v10 }
  0x94   : > { %v616_v61 = vadd.f32 %v614_v60, %v546_v59 }
  0x96   : > { %617 = vst.msk [vmem:[#allocation5] sm:$0xf] %vm1356_vm0, %v616_v61 }
  0x9d   : > { %v743_v7 = vld [vmem:[#allocation5] sm:$0xf] }
  0x9e   : > { %v748_v9 = vrot.slane %v743_v7, %v1432_v8  ;;  %v752_v0 = vrot.slane %v743_v7, %v1435_v62  ;;  %v756_v1 = vrot.slane %v743_v7, %v1438_v11  ;;  %v760_v2 = vrot.slane %v743_v7, %v1441_v63 }
  0xa0   : > { %v765_v4 = vsel %vm643_vm1, %v748_v9, 0.0  ;;  %v766_v16 = vsel %vm643_vm1, %v752_v0, 0.0  ;;  %v768_v19 = vsel %vm643_vm1, %v756_v1, 0.0  ;;  %v770_v20 = vsel %vm643_vm1, %v760_v2, 0.0 }
  0xa1   : > { %v767_v10 = vadd.f32 %v766_v16, %v765_v4 }
  0xa3   : > { %v769_v3 = vadd.f32 %v768_v19, %v767_v10 }
  0xa5   : > { %v771_v21 = vadd.f32 %v770_v20, %v769_v3 }
  0xa7   : > { %772 = vadd.xlane.f32.xlu1 %v771_v21 }
 0x108   : > { %v733_v8 = vpop.xlane.xlu1 %732 }
 0x109   : > { %v734_v25 = vrot.slane %v733_v8, 4 }
 0x10a   : > { %v652_v24 = vpop.xlane.xlu0 %651 }
 0x10b   : > { %v653_v13 = vrot.slane %v652_v24, 4  ;;  %v735_v26 = vadd.f32 %v734_v25, %v733_v8 }
 0x10d   : > { %v654_v62 = vadd.f32 %v653_v13, %v652_v24  ;;  %v736_v12 = vrot.slane %v735_v26, 2 }
 0x10f   : > { %v655_v11 = vrot.slane %v654_v62, 2  ;;  %v737_v22 = vadd.f32 %v736_v12, %v735_v26 }
 0x111   : > { %v656_v63 = vadd.f32 %v655_v11, %v654_v62  ;;  %v738_v14 = vrot.slane %v737_v22, 1 }
 0x113   : > { %v657_v27 = vrot.slane %v656_v63, 1  ;;  %v739_v5 = vadd.f32 %v738_v14, %v737_v22 }
 0x115   : > { %v658_v28 = vadd.f32 %v657_v27, %v656_v63 }
 0x117   : > { %v693_v29 = vpop.xlane.xlu0 %692  ;;  %971 = vpush %v658_v28 }
 0x118   : > { %v694_v17 = vrot.slane %v693_v29, 4 }
 0x11a   : > { %v695_v30 = vadd.f32 %v694_v17, %v693_v29 }
 0x11c   : > { %v696_v18 = vrot.slane %v695_v30, 2 }
 0x11e   : > { %v697_v15 = vadd.f32 %v696_v18, %v695_v30 }
 0x120   : > { %v698_v23 = vrot.slane %v697_v15, 1 }
 0x122   : > { %v699_v6 = vadd.f32 %v698_v23, %v697_v15 }
 0x124   : > { %973 = vpush %v699_v6 }
 0x125   : > { %975 = vpush %v739_v5 }
 0x134   : > { %v773_v31 = vpop.xlane.xlu1 %772 }
 0x135   : > { %v774_v32 = vrot.slane %v773_v31, 4 }
 0x137   : > { %v775_v33 = vadd.f32 %v774_v32, %v773_v31 }
 0x139   : > { %v776_v34 = vrot.slane %v775_v33, 2 }
 0x13b   : > { %v777_v35 = vadd.f32 %v776_v34, %v775_v33 }
 0x13d   : > { %v778_v36 = vrot.slane %v777_v35, 1 }
 0x13f   : > { %v779_v37 = vadd.f32 %v778_v36, %v777_v35 }
 0x141   : > { %977 = vpush %v779_v37 }
 0x148   : > { %s972_s24 = spop %971 }
 0x149   : > { %v660_v38 = vstv %s972_s24 }
 0x14a   : > { %662 = vst.msk [vmem:[%s312_s16] sm:$0x1] %vm661_vm2, %v660_v38 }
 0x155   : > { %s974_s10 = spop %973 }
 0x156   : > { %v701_v39 = vstv %s974_s10  ;;  %s976_s17 = spop %975 }
 0x157   : > { %702 = vst.msk [vmem:[%s315_s9] sm:$0x1] %vm661_vm2, %v701_v39  ;;  %v741_v40 = vstv %s976_s17 }
 0x158   : > { %742 = vst.msk [vmem:[%s318_s12] sm:$0x1] %vm661_vm2, %v741_v40 }
 0x172   : > { %s978_s15 = spop %977 }
 0x173   : > { %v781_v41 = vstv %s978_s15 }
 0x174   : > { %782 = vst.msk [vmem:[%s321_s13] sm:$0x1] %vm661_vm2, %v781_v41 }
 0x175 PF: > { %s22_s23 = sadd.s32 1, %s1171_s23   ;;  %s1542_s18 = smov %s1155_s19 }
 0x176   : > { %p19_p9 = scmp.ge.s32.totalorder %s22_s23, 4   ;;  %s1543_s19 = smov %s1159_s20 }
 0x177   : > { %s1544_s20 = smov %s1256_s30  ;;  %s1545_s21 = smov %s1167_s22 }
 0x178   : > { %s1546_s22 = smov %s1548_s25  ;;  %21 = sbr.rel (!%p19_p9) target bundleno = 6 (0x6), region = 125 }
 0x17f   :  { %836 = vsyncpa [#allocation7], 1 }
 0x180   :  { %838 = vsyncpa [#allocation7 + $0x1], 1 }
 0x181   :  { %839 = vsyncpa [#allocation9], 1 }
 0x182   :  { %841 = vsyncpa [#allocation9 + $0x1], 1 }

</bundles_post_ra>
